<compile_context>
chip_gen: v7x
topology: tpu7x:2x2x1
jax: 0.10.0
libtpu: 0.0.40
codegen_flags: <defaults>
</compile_context>

<pallas_src>
import functools

import jax
import jax.numpy as jnp
from jax.experimental import pallas as pl
from jax.experimental.pallas import tpu as pltpu


def _round_up(x: int, m: int) -> int:
    return ((x + m - 1) // m) * m


def _cdiv(a: int, b: int) -> int:
    return -(-a // b)


# Physical VMEM per core (v5e/v6e: 128 MiB, v7x: 64 MiB). Conservative
# fallback (v7x) if the query is unavailable on this build.
try:
    _VMEM_CAP = int(pltpu.get_tpu_info().vmem_capacity_bytes)
except Exception:  # pragma: no cover
    _VMEM_CAP = 64 << 20
_VMEM_BUDGET = min(int(_VMEM_CAP * 0.8), _VMEM_CAP - (8 << 20))


def _silu(h):
    # x*sigmoid(x) == x*0.5*(1 + tanh(x/2)) : one EUP transcendental (tanh)
    # instead of exp + divide (two EUP pushes).
    return h * (0.5 + 0.5 * jnp.tanh(0.5 * h))


def _mlp_kernel_resident(x_ref, w1_ref, w2_ref, o_ref):
    # Weights VMEM-resident across all row tiles (constant index_map);
    # no accumulator scratch, no predicated init/finalize.
    h = jnp.dot(x_ref[...], w1_ref[...], preferred_element_type=jnp.float32)
    h = _silu(h)
    o_ref[...] = jnp.dot(h.astype(w2_ref.dtype), w2_ref[...],
                         preferred_element_type=jnp.float32).astype(o_ref.dtype)


def _mlp_kernel_tiled(x_ref, w1_ref, w2_ref, o_ref, acc_ref):
    # Reduction over the 4H axis (last grid axis); f32 VMEM accumulator.
    k = pl.program_id(1)

    @pl.when(k == 0)
    def _():
        acc_ref[...] = jnp.zeros_like(acc_ref)

    h = jnp.dot(x_ref[...], w1_ref[...], preferred_element_type=jnp.float32)
    h = _silu(h)
    acc_ref[...] += jnp.dot(h.astype(w2_ref.dtype), w2_ref[...],
                            preferred_element_type=jnp.float32)

    @pl.when(k == pl.num_programs(1) - 1)
    def _():
        o_ref[...] = acc_ref[...].astype(o_ref.dtype)


def prepare_mlp_weights(w1, w2, *, compute_dtype=None):
    """Pre-transpose + lane-pad torch-layout weights. Call ONCE, outside jit.

    w1: (4H, H), w2: (H, 4H)  -- nn.Linear (out_features, in_features) layout.
    compute_dtype: optional MXU dtype (jnp.bfloat16 recommended on v6e/v7x).
    Returns (w1_t (Hp, H4p), w2_t (H4p, Hp)).  Zero padding is exact: padded
    input / intermediate columns hit zero weight rows, and padded output
    columns are sliced off in the wrapper.
    """
    H4, H = w1.shape
    assert w2.shape == (H, H4)
    if compute_dtype is not None:
        w1 = w1.astype(compute_dtype)
        w2 = w2.astype(compute_dtype)
    # 128-lane alignment; production H (multiples of 128/256) stays unpadded.
    Hp = _round_up(max(H, 128), 128)
    H4p = _round_up(max(H4, 128), 128)
    w1_t = jnp.zeros((Hp, H4p), w1.dtype).at[:H, :H4].set(w1.T)
    w2_t = jnp.zeros((H4p, Hp), w2.dtype).at[:H4, :H].set(w2.T)
    return jax.device_put(w1_t), jax.device_put(w2_t)


@functools.partial(jax.jit, static_argnames=("tm", "tn4"))
def mlp_forward(x, w1_t, w2_t, *, tm=512, tn4=None):
    """x: (B, S, H). w1_t / w2_t come from prepare_mlp_weights()."""
    B, S, H = x.shape
    Hp, H4p = w1_t.shape
    assert w2_t.shape == (H4p, Hp)
    assert w1_t.dtype == w2_t.dtype

    out_dtype = x.dtype
    if x.dtype != w1_t.dtype:
        # Matching MXU operand dtypes (e.g. bf16 x bf16 with f32 accumulation).
        x = x.astype(w1_t.dtype)

    x_b = jnp.dtype(x.dtype).itemsize
    w_b = jnp.dtype(w1_t.dtype).itemsize
    o_b = jnp.dtype(out_dtype).itemsize

    # VMEM footprint for a (tm_, cols) configuration, per-array dtypes:
    # double-buffered x / out / weight tiles + f32 accumulator + intermediate.
    def vmem_need(tm_, cols):
        return (2 * tm_ * Hp * (x_b + o_b)          # x + out tiles (dbl-buf)
                + 4 * Hp * cols * w_b               # W1^T + W2^T tiles (dbl-buf)
                + tm_ * Hp * 4                      # f32 accumulator / epilogue
                + tm_ * cols * (4 + w_b))           # h in f32 + cast for dot2

    # ---- Row tiling: clamp tm into budget, minimal padding, >= 2 tiles when
    # M exceeds one tile so the "parallel" axis shards across cores (v7x). ----
    M = B * S
    Mp8 = _round_up(M, 8)
    tm_t = max(8, _round_up(min(tm, Mp8), 8))
    while tm_t > 8 and vmem_need(tm_t, 128) > _VMEM_BUDGET:
        tm_t = max(8, _round_up(tm_t // 2, 8))
    n_rows = _cdiv(Mp8, tm_t)
    if n_rows == 1 and Mp8 >= 512:
        n_rows = 2                                   # keep a 2nd TensorCore busy
    tm_t = _round_up(_cdiv(Mp8, n_rows), 8)
    Mp = n_rows * tm_t

    x2d = x.reshape(M, H)
    if (Mp, Hp) != (M, H):                           # pad only when needed
        x2d = jnp.pad(x2d, ((0, Mp - M), (0, Hp - H)))

    # ---- Resident weights (no k axis) vs 4H-tiled reduction. ----
    resident = vmem_need(tm_t, H4p) <= _VMEM_BUDGET
    if not resident:
        if tn4 is None:
            tn4 = 128
            for cand in (1024, 512, 256):
                if H4p % cand == 0 and vmem_need(tm_t, cand) <= _VMEM_BUDGET:
                    tn4 = cand
                    break
        assert H4p % tn4 == 0

    cols = H4p if resident else tn4
    n_k = 1 if resident else H4p // tn4
    vmem_limit = min(max(32 << 20, int(vmem_need(tm_t, cols) * 1.3) + (2 << 20)),
                     _VMEM_CAP - (2 << 20))

    cost = pl.CostEstimate(
        flops=4 * Mp * Hp * H4p,                     # two matmuls
        transcendentals=Mp * H4p,                    # one tanh per element
        bytes_accessed=(x_b * Mp * Hp + o_b * Mp * Hp
                        + 2 * w_b * Hp * H4p * (1 if resident else n_rows)),
    )

    if resident:
        grid_spec = pltpu.PrefetchScalarGridSpec(
            num_scalar_prefetch=0,
            grid=(n_rows,),
            in_specs=[
                pl.BlockSpec((tm_t, Hp), lambda i: (i, 0)),    # x row tile
                pl.BlockSpec((Hp, H4p), lambda i: (0, 0)),     # W1^T, resident
                pl.BlockSpec((H4p, Hp), lambda i: (0, 0)),     # W2^T, resident
            ],
            out_specs=pl.BlockSpec((tm_t, Hp), lambda i: (i, 0)),
        )
        kernel = _mlp_kernel_resident
        dims = ("parallel",)
    else:
        grid_spec = pltpu.PrefetchScalarGridSpec(
            num_scalar_prefetch=0,
            grid=(n_rows, n_k),                      # reduction (4H) axis last
            in_specs=[
                pl.BlockSpec((tm_t, Hp), lambda i, k: (i, 0)),  # x row tile
                pl.BlockSpec((Hp, tn4), lambda i, k: (0, k)),   # W1^T 4H-slice
                pl.BlockSpec((tn4, Hp), lambda i, k: (k, 0)),   # W2^T 4H-slice
            ],
            out_specs=pl.BlockSpec((tm_t, Hp), lambda i, k: (i, 0)),
            scratch_shapes=[pltpu.VMEM((tm_t, Hp), jnp.float32)],
        )
        kernel = _mlp_kernel_tiled
        dims = ("parallel", "arbitrary")

    out = pl.pallas_call(
        kernel,
        out_shape=jax.ShapeDtypeStruct((Mp, Hp), out_dtype),
        grid_spec=grid_spec,
        compiler_params=pltpu.CompilerParams(
            dimension_semantics=dims, vmem_limit_bytes=vmem_limit),
        cost_estimate=cost,
    )(x2d, w1_t, w2_t)

    # TODO(synk): training-mode dropout (mlp_dropout) is not applied; this is
    # the eval-mode forward (dropout == identity).
    return out[:M, :H].reshape(B, S, H)


def reference_mlp(x, w1, w2):
    h = jnp.einsum("bsh,fh->bsf", x, w1)          # linear1 (no bias)
    h = h * jax.nn.sigmoid(h)                     # SiLU
    return jnp.einsum("bsf,hf->bsh", h, w2)       # linear2 (no bias)


if __name__ == "__main__":
    # Small shapes implied by the module: hidden_size=32, 4*hidden=128.
    B, S, H = 2, 8, 32
    H4 = 4 * H

    key = jax.random.PRNGKey(0)
    kx, k1, k2 = jax.random.split(key, 3)

    x = jax.random.normal(kx, (B, S, H), dtype=jnp.float32)
    # nn.Linear weight layout: (out_features, in_features)
    w1 = jax.random.normal(k1, (H4, H), dtype=jnp.float32) * (1.0 / H ** 0.5)
    w2 = jax.random.normal(k2, (H, H4), dtype=jnp.float32) * (1.0 / H4 ** 0.5)

    # One-time weight prep (transpose + lane pad) OUTSIDE jit.
    w1_t, w2_t = prepare_mlp_weights(w1, w2)

    y = mlp_forward(x, w1_t, w2_t)
    jax.block_until_ready(y)
    y_ref = reference_mlp(x, w1, w2)
    assert y.shape == (B, S, H)
    assert jnp.allclose(y, y_ref, atol=1e-4, rtol=1e-4)

    # Row-padding path (M not a multiple of 8 / the row tile).
    xb = jax.random.normal(kx, (3, 5, H), dtype=jnp.float32)
    yb = mlp_forward(xb, w1_t, w2_t)
    jax.block_until_ready(yb)
    assert yb.shape == (3, 5, H)
    assert jnp.allclose(yb, reference_mlp(xb, w1, w2), atol=1e-4, rtol=1e-4)

    # bf16 MXU path (recommended on v6e/v7x); f32 accumulation, f32 output.
    w1_tb, w2_tb = prepare_mlp_weights(w1, w2, compute_dtype=jnp.bfloat16)
    yc = mlp_forward(x, w1_tb, w2_tb)
    jax.block_until_ready(yc)
    assert yc.dtype == x.dtype
    assert jnp.allclose(yc, y_ref, atol=5e-2, rtol=5e-2)

    print("KERNEL_OK")
</pallas_src>

<mosaic_0001>
module attributes {stable_mosaic.version = 11 : i64} {
  func.func @_mlp_kernel_resident(%arg0: i32, %arg1: memref<16x128xf32, #tpu.memory_space<vmem>>, %arg2: memref<128x128xf32, #tpu.memory_space<vmem>>, %arg3: memref<128x128xf32, #tpu.memory_space<vmem>>, %arg4: memref<16x128xf32, #tpu.memory_space<vmem>>) attributes {dimension_semantics = [#tpu.dimension_semantics<parallel>], iteration_bounds = array<i64: 1>, scalar_prefetch = 0 : i64, scratch_operands = 0 : i64, tpu.core_type = #tpu.core_type<tc>, window_params = [{transform_indices = @transform_0, window_bounds = array<i64: 16, 128>}, {pipeline_mode = #tpu.pipeline_mode<synchronous>, transform_indices = @transform_1, window_bounds = array<i64: 128, 128>}, {pipeline_mode = #tpu.pipeline_mode<synchronous>, transform_indices = @transform_2, window_bounds = array<i64: 128, 128>}, {transform_indices = @transform_3, window_bounds = array<i64: 16, 128>}]} {
    %c0 = arith.constant 0 : index
    %c0_0 = arith.constant 0 : index
    %0 = vector.load %arg1[%c0, %c0_0] : memref<16x128xf32, #tpu.memory_space<vmem>>, vector<16x128xf32>
    %c0_1 = arith.constant 0 : index
    %c0_2 = arith.constant 0 : index
    %1 = vector.load %arg2[%c0_1, %c0_2] : memref<128x128xf32, #tpu.memory_space<vmem>>, vector<128x128xf32>
    %cst = arith.constant dense<0.000000e+00> : vector<16x128xf32>
    %2 = tpu.matmul %0, %1, %cst {dimension_numbers = #tpu.dot_dimension_numbers<[1], [0], [0], [1], [0, 0, 1, 1], [], []>} : vector<16x128xf32>, vector<128x128xf32>, vector<16x128xf32> -> vector<16x128xf32>
    %cst_3 = arith.constant 5.000000e-01 : f32
    %3 = vector.broadcast %cst_3 : f32 to vector<16x128xf32>
    %4 = arith.mulf %3, %2 : vector<16x128xf32>
    %5 = math.tanh %4 : vector<16x128xf32>
    %cst_4 = arith.constant 5.000000e-01 : f32
    %6 = vector.broadcast %cst_4 : f32 to vector<16x128xf32>
    %7 = arith.mulf %6, %5 : vector<16x128xf32>
    %cst_5 = arith.constant 5.000000e-01 : f32
    %8 = vector.broadcast %cst_5 : f32 to vector<16x128xf32>
    %9 = arith.addf %8, %7 : vector<16x128xf32>
    %10 = arith.mulf %2, %9 : vector<16x128xf32>
    %c0_6 = arith.constant 0 : index
    %c0_7 = arith.constant 0 : index
    %11 = vector.load %arg3[%c0_6, %c0_7] : memref<128x128xf32, #tpu.memory_space<vmem>>, vector<128x128xf32>
    %cst_8 = arith.constant dense<0.000000e+00> : vector<16x128xf32>
    %12 = tpu.matmul %10, %11, %cst_8 {dimension_numbers = #tpu.dot_dimension_numbers<[1], [0], [0], [1], [0, 0, 1, 1], [], []>} : vector<16x128xf32>, vector<128x128xf32>, vector<16x128xf32> -> vector<16x128xf32>
    %c0_9 = arith.constant 0 : index
    %c0_10 = arith.constant 0 : index
    %13 = vector.load %arg4[%c0_9, %c0_10] : memref<16x128xf32, #tpu.memory_space<vmem>>, vector<16x128xf32>
    tpu.vector_store %arg4[%c0_9, %c0_10], %12 {strides = array<i32>} : memref<16x128xf32, #tpu.memory_space<vmem>>, vector<16x128xf32>,
    return
  }
  func.func @transform_0(%arg0: i32) -> (i32, i32) {
    %c0_i32 = arith.constant 0 : i32
    %c0_i32_0 = arith.constant 0 : i32
    return %arg0, %c0_i32 : i32, i32
  }
  func.func @transform_1(%arg0: i32) -> (i32, i32) {
    %c0_i32 = arith.constant 0 : i32
    %c0_i32_0 = arith.constant 0 : i32
    %c0_i32_1 = arith.constant 0 : i32
    return %c0_i32, %c0_i32_0 : i32, i32
  }
  func.func @transform_2(%arg0: i32) -> (i32, i32) {
    %c0_i32 = arith.constant 0 : i32
    %c0_i32_0 = arith.constant 0 : i32
    %c0_i32_1 = arith.constant 0 : i32
    return %c0_i32, %c0_i32_0 : i32, i32
  }
  func.func @transform_3(%arg0: i32) -> (i32, i32) {
    %c0_i32 = arith.constant 0 : i32
    %c0_i32_0 = arith.constant 0 : i32
    return %arg0, %c0_i32 : i32, i32
  }
}

</mosaic_0001>

<bundles_post_ra>
// kernel: mlp_forward.1
= control target key start
LH: loop header
LB: loop body
LE: loop exit
PB: predicated region body
PF: predicated region fallthrough
CT: control target
= control target key end

     0   :  { %8 = vsyncpa [#allocation3], 0  ;;  %s530_s0 = inlined_call_operand.vmem [shape: f32[16,128], index: 0, kind: input, shape index: {}]   ;;  %s531_s1 = inlined_call_operand.hbm [shape: f32[128,128], index: 1, kind: input, shape index: {}]   ;;  %s532_s2 = inlined_call_operand.hbm [shape: f32[128,128], index: 2, kind: input, shape index: {}]   ;;  %s533_s3 = inlined_call_operand.vmem [shape: f32[16,128], index: 3, kind: output, shape index: {}]  }
   0x1   :  { %9 = vsyncpa [#allocation5], 0  ;;  %s470_s12 = smov [#allocation2]   ;;  %s422_s16 = scalar_lea.hbm %s531_s1, 2048 }
   0x2   :  { %s17_s13 = sshll.u32 %s470_s12, 4  ;;  %p423_p0 = scmp.ne.s32.totalorder %s531_s1, %s422_s16  ;;  %s18_s13 = int_to_ptr.vmem [resolvable:$true] %s17_s13 }
   0x3   :  { %p426_p1 = scmp.lt.u32.totalorder %s422_s16, %s531_s1 }
   0x5   :  { %p428_p2 = pnand %p426_p1, %p423_p0 }
   0x7   :  { %431 = shalt.err (!%p428_p2)
}
   0x8   :  { %s432_s21 = scalar_lea.vmem %s18_s13, 2048  ;;  %p437_p4 = scmp.lt.s32.totalorder %s18_s13, %s18_s13 }
   0x9   :  { %p433_p3 = scmp.ne.s32.totalorder %s18_s13, %s432_s21  ;;  %p438_p5 = scmp.lt.s32.totalorder %s432_s21, %s432_s21 }
   0xb   :  { %p439_p6 = por %p438_p5, %p437_p4 }
   0xd   :  { %p440_p7 = pnand %p439_p6, %p433_p3 }
   0xf   :  { %443 = shalt.err (!%p440_p7)
}
  0x10   :  { %s471_s22 = smov 128   ;;  %s472_s23 = smov 8  }
  0x11   :  { %23 = dma.hbm_to_vmem [thread:$0]  %s531_s1, 2048, %s18_s13, [#allocation3], %s471_s22, %s471_s22, %s472_s23  }
  0x12   :  { %s473_s26 = smov [#allocation4]   ;;  %s444_s30 = scalar_lea.hbm %s532_s2, 2048 }
  0x13   :  { %s29_s27 = sshll.u32 %s473_s26, 4  ;;  %p445_p8 = scmp.ne.s32.totalorder %s532_s2, %s444_s30  ;;  %s30_s27 = int_to_ptr.vmem [resolvable:$true] %s29_s27 }
  0x14   :  { %p448_p9 = scmp.lt.u32.totalorder %s444_s30, %s532_s2 }
  0x16   :  { %p450_p10 = pnand %p448_p9, %p445_p8 }
  0x18   :  { %453 = shalt.err (!%p450_p10)
}
  0x19   :  { %s454_s8 = scalar_lea.vmem %s30_s27, 2048  ;;  %p459_p12 = scmp.lt.s32.totalorder %s30_s27, %s30_s27 }
  0x1a   :  { %p455_p11 = scmp.ne.s32.totalorder %s30_s27, %s454_s8  ;;  %p460_p13 = scmp.lt.s32.totalorder %s454_s8, %s454_s8 }
  0x1c   :  { %p461_p0 = por %p460_p13, %p459_p12 }
  0x1e   :  { %p462_p1 = pnand %p461_p0, %p455_p11 }
  0x20   :  { %465 = shalt.err (!%p462_p1)
}
  0x21   :  { %35 = dma.hbm_to_vmem [thread:$0]  %s532_s2, 2048, %s30_s27, [#allocation5], %s471_s22, %s471_s22, %s472_s23  }
  0x22   :  { %466 = dma.done.wait [#allocation3], 2048  }
  0x23   :  { %467 = vsyncadd [#allocation3], 4294965248 }
  0x24   :  { %468 = dma.done.wait [#allocation5], 2048  }
  0x25   :  { %469 = vsyncadd [#allocation5], 4294965248  ;;  %v44_v0 = vld [vmem:[#allocation2] sm:$0xff]  ;;  %v45_v1 = vld [vmem:[#allocation2 + $0x8] sm:$0xff] }
  0x26   :  { %v46_v2 = vld [vmem:[#allocation2 + $0x10] sm:$0xff]  ;;  %v350_v3 = vpack.c.bf16 %v45_v1, %v44_v0  ;;  %v47_v4 = vld [vmem:[#allocation2 + $0x18] sm:$0xff]  ;;  %v48_v6 = vld [vmem:[#allocation2 + $0x20] sm:$0xff] }
  0x27   :  { %v354_v5 = vpack.c.bf16 %v47_v4, %v46_v2  ;;  %v49_v7 = vld [vmem:[#allocation2 + $0x28] sm:$0xff]  ;;  %v50_v9 = vld [vmem:[#allocation2 + $0x30] sm:$0xff]  ;;  %v51_v10 = vld [vmem:[#allocation2 + $0x38] sm:$0xff] }
  0x28   :  { %351 = vmatprep.subr.bf16.mxu0 %v350_v3  ;;  %v358_v8 = vpack.c.bf16 %v49_v7, %v48_v6  ;;  %v42_v11 = vld [vmem:[%s530_s0] sm:$0xff]  ;;  %v146_v13 = vld [vmem:[#allocation4 + $0x8] sm:$0xff]  ;;  %v147_v14 = vld [vmem:[#allocation4 + $0x10] sm:$0xff]  ;;  %v362_v20 = vpack.c.bf16 %v51_v10, %v50_v9 }
  0x29   :  { %353 = vmatpush3.bf16.msra.mxu0 %v350_v3  ;;  %312 = vmatprep.mubr.f32.mxu0 %v42_v11  ;;  %v145_v12 = vld [vmem:[#allocation4] sm:$0xff]  ;;  %v148_v16 = vld [vmem:[#allocation4 + $0x18] sm:$0xff]  ;;  %v150_v19 = vld [vmem:[#allocation4 + $0x28] sm:$0xff] }
  0x2a   :  { %355 = vmatprep.subr.bf16.mxu0 %v354_v5  ;;  %v382_v15 = vpack.c.bf16 %v146_v13, %v145_v12  ;;  %v386_v17 = vpack.c.bf16 %v148_v16, %v147_v14  ;;  %v149_v18 = vld [vmem:[#allocation4 + $0x20] sm:$0xff]  ;;  %v53_v22 = vld [vmem:[#allocation2 + $0x48] sm:$0xff]  ;;  %v54_v25 = vld [vmem:[#allocation2 + $0x50] sm:$0xff] }
  0x2b   :  { %v52_v21 = vld [vmem:[#allocation2 + $0x40] sm:$0xff]  ;;  %v390_v23 = vpack.c.bf16 %v150_v19, %v149_v18  ;;  %v55_v26 = vld [vmem:[#allocation2 + $0x58] sm:$0xff]  ;;  %v57_v29 = vld [vmem:[#allocation2 + $0x68] sm:$0xff] }
  0x2c   :  { %383 = vmatprep.subr.bf16.mxu1 %v382_v15  ;;  %v366_v24 = vpack.c.bf16 %v53_v22, %v52_v21  ;;  %v370_v27 = vpack.c.bf16 %v55_v26, %v54_v25  ;;  %v56_v28 = vld [vmem:[#allocation2 + $0x60] sm:$0xff]  ;;  %v58_v31 = vld [vmem:[#allocation2 + $0x70] sm:$0xff]  ;;  %v59_v32 = vld [vmem:[#allocation2 + $0x78] sm:$0xff] }
  0x2d   :  { %357 = vmatpush3.bf16.msra.mxu0 %v354_v5  ;;  %385 = vmatpush3.bf16.msra.mxu1 %v382_v15  ;;  %v374_v30 = vpack.c.bf16 %v57_v29, %v56_v28  ;;  %v378_v33 = vpack.c.bf16 %v59_v32, %v58_v31  ;;  %v43_v34 = vld [vmem:[%s530_s0 + $0x8] sm:$0xff]  ;;  %v151_v35 = vld [vmem:[#allocation4 + $0x30] sm:$0xff]  ;;  %v152_v36 = vld [vmem:[#allocation4 + $0x38] sm:$0xff] }
  0x2e   :  { %359 = vmatprep.subr.bf16.mxu0 %v358_v8  ;;  %387 = vmatprep.subr.bf16.mxu1 %v386_v17  ;;  %v394_v37 = vpack.c.bf16 %v152_v36, %v151_v35  ;;  %v153_v38 = vld [vmem:[#allocation4 + $0x40] sm:$0xff]  ;;  %v154_v39 = vld [vmem:[#allocation4 + $0x48] sm:$0xff]  ;;  %v155_v41 = vld [vmem:[#allocation4 + $0x50] sm:$0xff] }
  0x2f   :  { %v398_v40 = vpack.c.bf16 %v154_v39, %v153_v38  ;;  %v156_v42 = vld [vmem:[#allocation4 + $0x58] sm:$0xff]  ;;  %v157_v44 = vld [vmem:[#allocation4 + $0x60] sm:$0xff]  ;;  %v158_v45 = vld [vmem:[#allocation4 + $0x68] sm:$0xff] }
  0x30   :  { %v402_v43 = vpack.c.bf16 %v156_v42, %v155_v41  ;;  %v406_v46 = vpack.c.bf16 %v158_v45, %v157_v44  ;;  %v159_v47 = vld [vmem:[#allocation4 + $0x70] sm:$0xff]  ;;  %v160_v48 = vld [vmem:[#allocation4 + $0x78] sm:$0xff] }
  0x31   :  { %361 = vmatpush3.bf16.msra.mxu0 %v358_v8  ;;  %389 = vmatpush3.bf16.msra.mxu1 %v386_v17  ;;  %v410_v49 = vpack.c.bf16 %v160_v48, %v159_v47 }
  0x32   :  { %363 = vmatprep.subr.bf16.mxu0 %v362_v20  ;;  %391 = vmatprep.subr.bf16.mxu1 %v390_v23 }
  0x35   :  { %365 = vmatpush3.bf16.msra.mxu0 %v362_v20  ;;  %393 = vmatpush3.bf16.msra.mxu1 %v390_v23 }
  0x36   :  { %367 = vmatprep.subr.bf16.mxu0 %v366_v24  ;;  %395 = vmatprep.subr.bf16.mxu1 %v394_v37 }
  0x39   :  { %369 = vmatpush3.bf16.msra.mxu0 %v366_v24  ;;  %397 = vmatpush3.bf16.msra.mxu1 %v394_v37 }
  0x3a   :  { %371 = vmatprep.subr.bf16.mxu0 %v370_v27  ;;  %399 = vmatprep.subr.bf16.mxu1 %v398_v40 }
  0x3d   :  { %373 = vmatpush3.bf16.msra.mxu0 %v370_v27  ;;  %401 = vmatpush3.bf16.msra.mxu1 %v398_v40 }
  0x3e   :  { %375 = vmatprep.subr.bf16.mxu0 %v374_v30  ;;  %403 = vmatprep.subr.bf16.mxu1 %v402_v43 }
  0x41   :  { %377 = vmatpush3.bf16.msra.mxu0 %v374_v30  ;;  %405 = vmatpush3.bf16.msra.mxu1 %v402_v43 }
  0x42   :  { %379 = vmatprep.subr.bf16.mxu0 %v378_v33  ;;  %407 = vmatprep.subr.bf16.mxu1 %v406_v46 }
  0x45   :  { %381 = vmatpush3.bf16.msra.mxu0 %v378_v33  ;;  %409 = vmatpush3.bf16.msra.mxu1 %v406_v46 }
  0x46   :  { %411 = vmatprep.subr.bf16.mxu1 %v410_v49 }
  0x48   :  { %313 = vmatmul.mubr.f32.vlgmr.msra.gmra.mrb[0].mxu0 %v43_v34 }
  0x49   :  { %413 = vmatpush3.bf16.msra.mxu1 %v410_v49 }
 0x11b   :  { %v314_v50 = vpop.f32.mrb[0].mxu0 }
 0x11c   :  { %v136_v51 = vmul.f32 0.5, %v314_v50  ;;  %v126_v52 = vpop.f32.mrb[1].mxu0 }
 0x11d   :  { %v135_v53 = vmul.f32 0.5, %v126_v52 }
 0x11e   :  { %418 = vtanh.f32 %v136_v51 }
 0x11f   :  { %420 = vtanh.f32 %v135_v53 }
 0x128   :  { %v419_v54 = vpop.eup %418 }
 0x129   :  { %v421_v55 = vpop.eup %420  ;;  %v140_v56 = vmul.f32 0.5, %v419_v54 }
 0x12a   :  { %v139_v57 = vmul.f32 0.5, %v421_v55 }
 0x12b   :  { %v142_v58 = vadd.f32 0.5, %v140_v56 }
 0x12c   :  { %v141_v59 = vadd.f32 0.5, %v139_v57 }
 0x12d   :  { %v144_v61 = vmul.f32 %v314_v50, %v142_v58 }
 0x12e   :  { %v143_v60 = vmul.f32 %v141_v59, %v126_v52 }
 0x130   :  { %347 = vmatprep.mubr.f32.mxu1 %v143_v60 }
 0x131   :  { %348 = vmatmul.mubr.f32.vlgmr.msra.gmra.mrb[0].mxu1 %v144_v61 }
 0x204   :  { %v349_v62 = vpop.f32.mrb[0].mxu1 }
 0x205   :  { %237 = vst [vmem:[%s533_s3 + $0x8] sm:$0xff] %v349_v62  ;;  %v227_v63 = vpop.f32.mrb[1].mxu1 }
 0x206   :  { %236 = vst [vmem:[%s533_s3] sm:$0xff] %v227_v63 }
 0x207   :  { %242 = vsyncpa [#allocation3], 1 }
 0x208   :  { %243 = vsyncpa [#allocation5], 1 }

</bundles_post_ra>
